<compile_context>
chip_gen: v6e
topology: v6e:2x2x1
jax: 0.10.0
libtpu: 0.0.40
codegen_flags: <defaults>
</compile_context>

<pallas_src>
import functools

import jax
import jax.numpy as jnp
from jax import lax
from jax.experimental import pallas as pl
from jax.experimental.pallas import tpu as pltpu

LANES = 128
SUBLANES = 8
ROW_BLOCK_CAP = 4096  # rows per grid step -> 2 MiB per f32 input per buffer


def _device_tuning():
    """Generation-aware (row_block_cap, num_core_shards)."""
    try:
        kind = jax.devices()[0].device_kind.lower()
    except Exception:  # pragma: no cover - defensive
        kind = ""
    if "v7" in kind:
        # 2 TensorCores / chip on v7x: shard the stream across both cores.
        return ROW_BLOCK_CAP, 2
    return ROW_BLOCK_CAP, 1


def _l1_nanmean_kernel(o_ref, t_ref, sum_ref, cnt_ref, *, use_weights,
                       block_rows, rows_total, num_blocks, steps_per_shard):
    """Accumulates (8,128) partial sums of (optionally weighted) |o - t| and
    partial non-NaN counts, per core shard.  Final reduction happens outside."""
    c = pl.program_id(0)           # core shard
    i = pl.program_id(1)           # step within shard
    g = c * steps_per_shard + i    # global (logical) row-block index

    @pl.when(i == 0)
    def _():
        sum_ref[...] = jnp.zeros_like(sum_ref)
        cnt_ref[...] = jnp.zeros_like(cnt_ref)

    folds = block_rows // SUBLANES

    def accumulate(masked):
        o = o_ref[...].astype(jnp.float32)
        t = t_ref[...].astype(jnp.float32)
        d = jnp.abs(o - t)
        if use_weights:
            d = d * jnp.where(t == 0.0, jnp.float32(0.4), jnp.float32(0.6))
        valid = d == d  # NaN-aware; cheaper than logical_not(isnan)
        if masked:
            # Final (possibly partial) block: rows past the logical end of the
            # input hold unspecified padding -> select them out explicitly.
            row = lax.broadcasted_iota(jnp.int32, (block_rows, LANES), 0)
            valid = jnp.logical_and(valid, row < (rows_total - g * block_rows))
        dm = jnp.where(valid, d, jnp.float32(0.0))
        cm = valid.astype(jnp.float32)
        # Fold the (block_rows, 128) tile onto the vreg-shaped (8, 128)
        # accumulators with pure VPU adds (no per-step cross-lane reduction).
        sum_ref[...] += jnp.sum(dm.reshape(folds, SUBLANES, LANES), axis=0)
        cnt_ref[...] += jnp.sum(cm.reshape(folds, SUBLANES, LANES), axis=0)

    # Bulk blocks: no tail masking (keeps VALU work minimal).
    @pl.when(g < num_blocks - 1)
    def _():
        accumulate(masked=False)

    # Final real block: mask unspecified padding rows.  Phantom blocks
    # (g >= num_blocks, from per-core load balancing) fall through and do
    # nothing, so their (clamped, duplicated) data is never double counted.
    @pl.when(g == num_blocks - 1)
    def _():
        accumulate(masked=True)


def _as_stream_dtype(x):
    """Flatten; keep <=32-bit floats in their native dtype, else cast to f32."""
    x = jnp.asarray(x).reshape(-1)
    if jnp.issubdtype(x.dtype, jnp.floating) and x.dtype.itemsize <= 4:
        return x
    return x.astype(jnp.float32)


def custom_loss(output, target, *, use_weights=False):
    """Pallas implementation of CustomLoss().forward(output, target).

    output, target: arrays of any shape / length N (flattened).  Returns a
    scalar float32 == nanmean(|output - target|) (optionally weighted; the
    weighted variant divides by the non-NaN count, exactly like the torch
    module's nanmean(diff * weights)).
    """
    output = _as_stream_dtype(output)
    target = _as_stream_dtype(target)
    n = output.shape[0]
    if target.shape[0] != n:
        raise ValueError("output and target must have the same number of elements")

    # Sub-32-bit inputs use (16,128) native tiles -> 16-row block alignment.
    row_align = SUBLANES
    if output.dtype.itemsize < 4 or target.dtype.itemsize < 4:
        row_align = 16

    # Pad with NaN only up to a lane multiple (and a minimum row count for
    # tiny inputs).  NaN padding is excluded by the nanmean mask.  When n is
    # already a multiple of 128 no copy is made at all.
    n_pad = max(-(-n // LANES) * LANES, row_align * LANES)
    if n_pad != n:
        output = jnp.concatenate(
            [output, jnp.full((n_pad - n,), jnp.nan, dtype=output.dtype)])
        target = jnp.concatenate(
            [target, jnp.full((n_pad - n,), jnp.nan, dtype=target.dtype)])

    rows_total = n_pad // LANES
    o2 = output.reshape(rows_total, LANES)   # free bitcast
    t2 = target.reshape(rows_total, LANES)

    block_cap, num_shards = _device_tuning()
    block_rows = min(block_cap, (rows_total // row_align) * row_align)
    num_blocks = -(-rows_total // block_rows)
    if num_blocks < 2:
        num_shards = 1
    steps_per_shard = -(-num_blocks // num_shards)

    kernel = functools.partial(
        _l1_nanmean_kernel,
        use_weights=use_weights,
        block_rows=block_rows,
        rows_total=rows_total,
        num_blocks=num_blocks,
        steps_per_shard=steps_per_shard,
    )

    def in_index(c, i):
        # Clamp phantom load-balancing steps onto the last real block; their
        # contribution is skipped inside the kernel.
        return (jnp.minimum(c * steps_per_shard + i, num_blocks - 1), 0)

    acc_spec = pl.BlockSpec((None, SUBLANES, LANES), lambda c, i: (c, 0, 0))

    # Double-buffered inputs + elementwise f32 temporaries + headroom.
    block_in_bytes = block_rows * LANES * (o2.dtype.itemsize + t2.dtype.itemsize)
    vmem_limit = 2 * block_in_bytes + 12 * block_rows * LANES * 4 + (4 << 20)
    vmem_limit = int(min(max(vmem_limit, 32 << 20), 56 << 20))

    sum_out, cnt_out = pl.pallas_call(
        kernel,
        out_shape=(
            jax.ShapeDtypeStruct((num_shards, SUBLANES, LANES), jnp.float32),
            jax.ShapeDtypeStruct((num_shards, SUBLANES, LANES), jnp.float32),
        ),
        grid_spec=pltpu.PrefetchScalarGridSpec(
            num_scalar_prefetch=0,
            grid=(num_shards, steps_per_shard),
            in_specs=[
                pl.BlockSpec((block_rows, LANES), in_index),
                pl.BlockSpec((block_rows, LANES), in_index),
            ],
            out_specs=(acc_spec, acc_spec),
        ),
        compiler_params=pltpu.CompilerParams(
            dimension_semantics=("parallel", "arbitrary"),
            vmem_limit_bytes=vmem_limit,
        ),
        cost_estimate=pl.CostEstimate(
            flops=8 * n_pad,
            transcendentals=0,
            bytes_accessed=o2.size * o2.dtype.itemsize
            + t2.size * t2.dtype.itemsize
            + 2 * num_shards * SUBLANES * LANES * 4,
        ),
    )(o2, t2)

    # Final tiny reduction + divide in XLA.  Per-slot f32 counts stay exact up
    # to 2^24 elements per slot (~1.7e10 total), far beyond realistic inputs.
    total = jnp.sum(sum_out)
    count = jnp.sum(cnt_out)
    return (total / count).astype(jnp.float32)


def _reference(output, target, use_weights=False):
    output = jnp.asarray(output, jnp.float32).reshape(-1)
    target = jnp.asarray(target, jnp.float32).reshape(-1)
    diff = jnp.abs(output - target)
    if use_weights:
        diff = diff * jnp.where(target == 0.0, 0.4, 0.6)
    return jnp.nanmean(diff)


if __name__ == "__main__":
    key = jax.random.PRNGKey(0)
    k1, k2, k3, k4 = jax.random.split(key, 4)

    # Flat prediction / target vectors (the module is a scalar loss over 1-D y).
    N = 2048
    y_pred = jax.random.normal(k1, (N,), dtype=jnp.float32)
    y_true = jax.random.normal(k2, (N,), dtype=jnp.float32)
    zero_mask = jax.random.uniform(k3, (N,)) < 0.3
    y_true = jnp.where(zero_mask, 0.0, y_true)
    y_true = y_true.at[7].set(jnp.nan).at[500].set(jnp.nan)

    loss = custom_loss(y_pred, y_true)
    jax.block_until_ready(loss)
    ref = _reference(y_pred, y_true)
    assert jnp.allclose(loss, ref, rtol=1e-5, atol=1e-6), (loss, ref)

    # Weighted variant (use_weights=True constructor branch, coin-flip off).
    loss_w = custom_loss(y_pred, y_true, use_weights=True)
    jax.block_until_ready(loss_w)
    ref_w = _reference(y_pred, y_true, use_weights=True)
    assert jnp.allclose(loss_w, ref_w, rtol=1e-5, atol=1e-6), (loss_w, ref_w)

    # Ragged length (not a multiple of 128): small NaN pad + in-kernel masking
    # of the partial last row-block.
    M = 1337
    loss_r = custom_loss(y_pred[:M], y_true[:M])
    jax.block_until_ready(loss_r)
    ref_r = _reference(y_pred[:M], y_true[:M])
    assert jnp.allclose(loss_r, ref_r, rtol=1e-5, atol=1e-6), (loss_r, ref_r)

    # Multi-block streaming path (bulk unmasked blocks + masked final block).
    NB = 1_000_000
    kb1, kb2 = jax.random.split(k4)
    yb_pred = jax.random.normal(kb1, (NB,), dtype=jnp.float32)
    yb_true = jax.random.normal(kb2, (NB,), dtype=jnp.float32)
    yb_true = yb_true.at[123].set(jnp.nan).at[999_999].set(jnp.nan)
    loss_b = custom_loss(yb_pred, yb_true)
    jax.block_until_ready(loss_b)
    ref_b = _reference(yb_pred, yb_true)
    assert jnp.allclose(loss_b, ref_b, rtol=1e-4, atol=1e-6), (loss_b, ref_b)

    # Native bf16 streaming (no wrapper upcast; upcast happens in-register).
    loss_bf = custom_loss(y_pred.astype(jnp.bfloat16), y_true.astype(jnp.bfloat16))
    jax.block_until_ready(loss_bf)
    ref_bf = _reference(y_pred.astype(jnp.bfloat16), y_true.astype(jnp.bfloat16))
    assert jnp.allclose(loss_bf, ref_bf, rtol=1e-4, atol=1e-6), (loss_bf, ref_bf)

    print("KERNEL_OK")
</pallas_src>

<mosaic_0001>
module attributes {stable_mosaic.version = 11 : i64} {
  func.func @_l1_nanmean_kernel(%arg0: i32, %arg1: i32, %arg2: memref<16x128xf32, #tpu.memory_space<vmem>>, %arg3: memref<16x128xf32, #tpu.memory_space<vmem>>, %arg4: memref<1x8x128xf32, #tpu.memory_space<vmem>>, %arg5: memref<1x8x128xf32, #tpu.memory_space<vmem>>) attributes {dimension_semantics = [#tpu.dimension_semantics<parallel>, #tpu.dimension_semantics<arbitrary>], iteration_bounds = array<i64: 1, 1>, scalar_prefetch = 0 : i64, scratch_operands = 0 : i64, tpu.core_type = #tpu.core_type<tc>, window_params = [{transform_indices = @transform_0, window_bounds = array<i64: 16, 128>}, {transform_indices = @transform_1, window_bounds = array<i64: 16, 128>}, {transform_indices = @transform_2, window_bounds = array<i64: 1, 8, 128>}, {transform_indices = @transform_3, window_bounds = array<i64: 1, 8, 128>}]} {
    %c1_i32 = arith.constant 1 : i32
    %0 = arith.muli %arg0, %c1_i32 : i32
    %1 = arith.addi %0, %arg1 : i32
    %c0_i32 = arith.constant 0 : i32
    %2 = arith.cmpi eq, %arg1, %c0_i32 : i32
    %3 = arith.extui %2 : i1 to i32
    %c0_i32_0 = arith.constant 0 : i32
    %4 = arith.cmpi ne, %3, %c0_i32_0 : i32
    scf.if %4 {
      %cst = arith.constant 0.000000e+00 : f32
      %11 = vector.broadcast %cst : f32 to vector<8x128xf32>
      %c0 = arith.constant 0 : index
      %c0_5 = arith.constant 0 : index
      %c0_6 = arith.constant 0 : index
      %12 = vector.load %arg4[%c0, %c0_5, %c0_6] : memref<1x8x128xf32, #tpu.memory_space<vmem>>, vector<1x8x128xf32>
      %13 = vector.shape_cast %12 : vector<1x8x128xf32> to vector<8x128xf32>
      %14 = vector.shape_cast %11 : vector<8x128xf32> to vector<1x8x128xf32>
      tpu.vector_store %arg4[%c0, %c0_5, %c0_6], %14 {strides = array<i32>} : memref<1x8x128xf32, #tpu.memory_space<vmem>>, vector<1x8x128xf32>,
      %cst_7 = arith.constant 0.000000e+00 : f32
      %15 = vector.broadcast %cst_7 : f32 to vector<8x128xf32>
      %c0_8 = arith.constant 0 : index
      %c0_9 = arith.constant 0 : index
      %c0_10 = arith.constant 0 : index
      %16 = vector.load %arg5[%c0_8, %c0_9, %c0_10] : memref<1x8x128xf32, #tpu.memory_space<vmem>>, vector<1x8x128xf32>
      %17 = vector.shape_cast %16 : vector<1x8x128xf32> to vector<8x128xf32>
      %18 = vector.shape_cast %15 : vector<8x128xf32> to vector<1x8x128xf32>
      tpu.vector_store %arg5[%c0_8, %c0_9, %c0_10], %18 {strides = array<i32>} : memref<1x8x128xf32, #tpu.memory_space<vmem>>, vector<1x8x128xf32>,
    } else {
    }
    %c0_i32_1 = arith.constant 0 : i32
    %5 = arith.cmpi slt, %1, %c0_i32_1 : i32
    %6 = arith.extui %5 : i1 to i32
    %c0_i32_2 = arith.constant 0 : i32
    %7 = arith.cmpi ne, %6, %c0_i32_2 : i32
    scf.if %7 {
      %c0 = arith.constant 0 : index
      %c0_5 = arith.constant 0 : index
      %11 = vector.load %arg2[%c0, %c0_5] : memref<16x128xf32, #tpu.memory_space<vmem>>, vector<16x128xf32>
      %c0_6 = arith.constant 0 : index
      %c0_7 = arith.constant 0 : index
      %12 = vector.load %arg3[%c0_6, %c0_7] : memref<16x128xf32, #tpu.memory_space<vmem>>, vector<16x128xf32>
      %13 = arith.subf %11, %12 : vector<16x128xf32>
      %14 = math.absf %13 : vector<16x128xf32>
      %15 = arith.cmpf oeq, %14, %14 : vector<16x128xf32>
      %cst = arith.constant 0.000000e+00 : f32
      %16 = vector.broadcast %cst : f32 to vector<16x128xf32>
      %17 = arith.select %15, %14, %16 : vector<16x128xi1>, vector<16x128xf32>
      %18 = arith.extui %15 : vector<16x128xi1> to vector<16x128xi32>
      %19 = arith.sitofp %18 : vector<16x128xi32> to vector<16x128xf32>
      %c0_8 = arith.constant 0 : index
      %c0_9 = arith.constant 0 : index
      %c0_10 = arith.constant 0 : index
      %20 = vector.load %arg4[%c0_8, %c0_9, %c0_10] : memref<1x8x128xf32, #tpu.memory_space<vmem>>, vector<1x8x128xf32>
      %21 = vector.shape_cast %20 : vector<1x8x128xf32> to vector<8x128xf32>
      %22 = vector.shape_cast %17 : vector<16x128xf32> to vector<2x8x128xf32>
      %cst_11 = arith.constant dense<0.000000e+00> : vector<8x128xf32>
      %23 = vector.multi_reduction <add>, %22, %cst_11 [0] : vector<2x8x128xf32> to vector<8x128xf32>
      %24 = arith.addf %21, %23 : vector<8x128xf32>
      %c0_12 = arith.constant 0 : index
      %c0_13 = arith.constant 0 : index
      %c0_14 = arith.constant 0 : index
      %25 = vector.load %arg4[%c0_12, %c0_13, %c0_14] : memref<1x8x128xf32, #tpu.memory_space<vmem>>, vector<1x8x128xf32>
      %26 = vector.shape_cast %25 : vector<1x8x128xf32> to vector<8x128xf32>
      %27 = vector.shape_cast %24 : vector<8x128xf32> to vector<1x8x128xf32>
      tpu.vector_store %arg4[%c0_12, %c0_13, %c0_14], %27 {strides = array<i32>} : memref<1x8x128xf32, #tpu.memory_space<vmem>>, vector<1x8x128xf32>,
      %c0_15 = arith.constant 0 : index
      %c0_16 = arith.constant 0 : index
      %c0_17 = arith.constant 0 : index
      %28 = vector.load %arg5[%c0_15, %c0_16, %c0_17] : memref<1x8x128xf32, #tpu.memory_space<vmem>>, vector<1x8x128xf32>
      %29 = vector.shape_cast %28 : vector<1x8x128xf32> to vector<8x128xf32>
      %30 = vector.shape_cast %19 : vector<16x128xf32> to vector<2x8x128xf32>
      %cst_18 = arith.constant dense<0.000000e+00> : vector<8x128xf32>
      %31 = vector.multi_reduction <add>, %30, %cst_18 [0] : vector<2x8x128xf32> to vector<8x128xf32>
      %32 = arith.addf %29, %31 : vector<8x128xf32>
      %c0_19 = arith.constant 0 : index
      %c0_20 = arith.constant 0 : index
      %c0_21 = arith.constant 0 : index
      %33 = vector.load %arg5[%c0_19, %c0_20, %c0_21] : memref<1x8x128xf32, #tpu.memory_space<vmem>>, vector<1x8x128xf32>
      %34 = vector.shape_cast %33 : vector<1x8x128xf32> to vector<8x128xf32>
      %35 = vector.shape_cast %32 : vector<8x128xf32> to vector<1x8x128xf32>
      tpu.vector_store %arg5[%c0_19, %c0_20, %c0_21], %35 {strides = array<i32>} : memref<1x8x128xf32, #tpu.memory_space<vmem>>, vector<1x8x128xf32>,
    } else {
    }
    %c0_i32_3 = arith.constant 0 : i32
    %8 = arith.cmpi eq, %1, %c0_i32_3 : i32
    %9 = arith.extui %8 : i1 to i32
    %c0_i32_4 = arith.constant 0 : i32
    %10 = arith.cmpi ne, %9, %c0_i32_4 : i32
    scf.if %10 {
      %c0 = arith.constant 0 : index
      %c0_5 = arith.constant 0 : index
      %11 = vector.load %arg2[%c0, %c0_5] : memref<16x128xf32, #tpu.memory_space<vmem>>, vector<16x128xf32>
      %c0_6 = arith.constant 0 : index
      %c0_7 = arith.constant 0 : index
      %12 = vector.load %arg3[%c0_6, %c0_7] : memref<16x128xf32, #tpu.memory_space<vmem>>, vector<16x128xf32>
      %13 = arith.subf %11, %12 : vector<16x128xf32>
      %14 = math.absf %13 : vector<16x128xf32>
      %15 = arith.cmpf oeq, %14, %14 : vector<16x128xf32>
      %16 = tpu.iota {dimensions = array<i32: 0>} : vector<16x128xi32>
      %c16_i32 = arith.constant 16 : i32
      %17 = arith.muli %1, %c16_i32 : i32
      %c16_i32_8 = arith.constant 16 : i32
      %18 = arith.subi %c16_i32_8, %17 : i32
      %19 = vector.broadcast %18 : i32 to vector<16x128xi32>
      %20 = arith.cmpi slt, %16, %19 : vector<16x128xi32>
      %21 = arith.andi %15, %20 : vector<16x128xi1>
      %cst = arith.constant 0.000000e+00 : f32
      %22 = vector.broadcast %cst : f32 to vector<16x128xf32>
      %23 = arith.select %21, %14, %22 : vector<16x128xi1>, vector<16x128xf32>
      %24 = arith.extui %21 : vector<16x128xi1> to vector<16x128xi32>
      %25 = arith.sitofp %24 : vector<16x128xi32> to vector<16x128xf32>
      %c0_9 = arith.constant 0 : index
      %c0_10 = arith.constant 0 : index
      %c0_11 = arith.constant 0 : index
      %26 = vector.load %arg4[%c0_9, %c0_10, %c0_11] : memref<1x8x128xf32, #tpu.memory_space<vmem>>, vector<1x8x128xf32>
      %27 = vector.shape_cast %26 : vector<1x8x128xf32> to vector<8x128xf32>
      %28 = vector.shape_cast %23 : vector<16x128xf32> to vector<2x8x128xf32>
      %cst_12 = arith.constant dense<0.000000e+00> : vector<8x128xf32>
      %29 = vector.multi_reduction <add>, %28, %cst_12 [0] : vector<2x8x128xf32> to vector<8x128xf32>
      %30 = arith.addf %27, %29 : vector<8x128xf32>
      %c0_13 = arith.constant 0 : index
      %c0_14 = arith.constant 0 : index
      %c0_15 = arith.constant 0 : index
      %31 = vector.load %arg4[%c0_13, %c0_14, %c0_15] : memref<1x8x128xf32, #tpu.memory_space<vmem>>, vector<1x8x128xf32>
      %32 = vector.shape_cast %31 : vector<1x8x128xf32> to vector<8x128xf32>
      %33 = vector.shape_cast %30 : vector<8x128xf32> to vector<1x8x128xf32>
      tpu.vector_store %arg4[%c0_13, %c0_14, %c0_15], %33 {strides = array<i32>} : memref<1x8x128xf32, #tpu.memory_space<vmem>>, vector<1x8x128xf32>,
      %c0_16 = arith.constant 0 : index
      %c0_17 = arith.constant 0 : index
      %c0_18 = arith.constant 0 : index
      %34 = vector.load %arg5[%c0_16, %c0_17, %c0_18] : memref<1x8x128xf32, #tpu.memory_space<vmem>>, vector<1x8x128xf32>
      %35 = vector.shape_cast %34 : vector<1x8x128xf32> to vector<8x128xf32>
      %36 = vector.shape_cast %25 : vector<16x128xf32> to vector<2x8x128xf32>
      %cst_19 = arith.constant dense<0.000000e+00> : vector<8x128xf32>
      %37 = vector.multi_reduction <add>, %36, %cst_19 [0] : vector<2x8x128xf32> to vector<8x128xf32>
      %38 = arith.addf %35, %37 : vector<8x128xf32>
      %c0_20 = arith.constant 0 : index
      %c0_21 = arith.constant 0 : index
      %c0_22 = arith.constant 0 : index
      %39 = vector.load %arg5[%c0_20, %c0_21, %c0_22] : memref<1x8x128xf32, #tpu.memory_space<vmem>>, vector<1x8x128xf32>
      %40 = vector.shape_cast %39 : vector<1x8x128xf32> to vector<8x128xf32>
      %41 = vector.shape_cast %38 : vector<8x128xf32> to vector<1x8x128xf32>
      tpu.vector_store %arg5[%c0_20, %c0_21, %c0_22], %41 {strides = array<i32>} : memref<1x8x128xf32, #tpu.memory_space<vmem>>, vector<1x8x128xf32>,
    } else {
    }
    return
  }
  func.func @transform_0(%arg0: i32, %arg1: i32) -> (i32, i32) {
    %c1_i32 = arith.constant 1 : i32
    %0 = arith.muli %arg0, %c1_i32 : i32
    %1 = arith.addi %0, %arg1 : i32
    %c0_i32 = arith.constant 0 : i32
    %2 = arith.minsi %1, %c0_i32 : i32
    %c0_i32_0 = arith.constant 0 : i32
    %c0_i32_1 = arith.constant 0 : i32
    return %2, %c0_i32_0 : i32, i32
  }
  func.func @transform_1(%arg0: i32, %arg1: i32) -> (i32, i32) {
    %c1_i32 = arith.constant 1 : i32
    %0 = arith.muli %arg0, %c1_i32 : i32
    %1 = arith.addi %0, %arg1 : i32
    %c0_i32 = arith.constant 0 : i32
    %2 = arith.minsi %1, %c0_i32 : i32
    %c0_i32_0 = arith.constant 0 : i32
    %c0_i32_1 = arith.constant 0 : i32
    return %2, %c0_i32_0 : i32, i32
  }
  func.func @transform_2(%arg0: i32, %arg1: i32) -> (i32, i32, i32) {
    %c0_i32 = arith.constant 0 : i32
    %c0_i32_0 = arith.constant 0 : i32
    %c0_i32_1 = arith.constant 0 : i32
    return %arg0, %c0_i32, %c0_i32_0 : i32, i32, i32
  }
  func.func @transform_3(%arg0: i32, %arg1: i32) -> (i32, i32, i32) {
    %c0_i32 = arith.constant 0 : i32
    %c0_i32_0 = arith.constant 0 : i32
    %c0_i32_1 = arith.constant 0 : i32
    return %arg0, %c0_i32, %c0_i32_0 : i32, i32, i32
  }
}

</mosaic_0001>

<bundles_post_ra>
// kernel: tpu_custom_call.1
= control target key start
LH: loop header
LB: loop body
LE: loop exit
PB: predicated region body
PF: predicated region fallthrough
CT: control target
= control target key end

     0   :  { %9 = vsyncpa [#allocation3], 0  ;;  %s308_s0 = inlined_call_operand.hbm [shape: f32[16,128], index: 0, kind: input, shape index: {}]   ;;  %s309_s1 = inlined_call_operand.hbm [shape: f32[16,128], index: 1, kind: input, shape index: {}]   ;;  %s310_s2 = inlined_call_operand.hbm [shape: f32[1,8,128], index: 2, kind: output, shape index: {0}]   ;;  %s311_s3 = inlined_call_operand.hbm [shape: f32[1,8,128], index: 3, kind: output, shape index: {1}]  }
   0x1   :  { %10 = vsyncpa [#allocation6], 0 }
   0x2   :  { %11 = vsyncpa [#allocation4], 0 }
   0x3   :  { %12 = vsyncpa [#allocation9], 0  ;;  %s269_s12 = smov [#allocation2]  }
   0x4   :  { %s24_s13 = sshll.u32 %s269_s12, 4  ;;  %s25_s13 = int_to_ptr.vmem [resolvable:$true] %s24_s13 }
   0x5   :  { %s189_s14 = scalar_lea.vmem %s25_s13, 256  ;;  %p194_p1 = scmp.lt.s32.totalorder %s25_s13, %s25_s13 }
   0x6   :  { %p190_p0 = scmp.ne.s32.totalorder %s25_s13, %s189_s14  ;;  %p195_p2 = scmp.lt.s32.totalorder %s189_s14, %s189_s14 }
   0x8   :  { %p196_p3 = por %p195_p2, %p194_p1 }
   0xa   :  { %p197_p4 = pnand %p196_p3, %p190_p0 }
   0xc   :  { %200 = shalt.err (!%p197_p4)
}
   0xd   :  { %s270_s15 = smov 128   ;;  %s271_s16 = smov 8  }
   0xe   :  { %30 = dma.hbm_to_vmem [thread:$0]  %s308_s0, 256, %s25_s13, [#allocation3], %s270_s15, %s270_s15, %s271_s16  }
   0xf   :  { %s272_s19 = smov [#allocation5]  }
  0x10   :  { %s42_s20 = sshll.u32 %s272_s19, 4  ;;  %s43_s20 = int_to_ptr.vmem [resolvable:$true] %s42_s20 }
  0x11   :  { %s209_s21 = scalar_lea.vmem %s43_s20, 256  ;;  %p214_p6 = scmp.lt.s32.totalorder %s43_s20, %s43_s20 }
  0x12   :  { %p210_p5 = scmp.ne.s32.totalorder %s43_s20, %s209_s21  ;;  %p215_p7 = scmp.lt.s32.totalorder %s209_s21, %s209_s21 }
  0x14   :  { %p216_p8 = por %p215_p7, %p214_p6 }
  0x16   :  { %p217_p9 = pnand %p216_p8, %p210_p5 }
  0x18   :  { %220 = shalt.err (!%p217_p9)
}
  0x19   :  { %48 = dma.hbm_to_vmem [thread:$0]  %s309_s1, 256, %s43_s20, [#allocation6], %s270_s15, %s270_s15, %s271_s16  }
  0x1a   :  { %261 = dma.done.wait [#allocation3], 256  }
  0x1b   :  { %262 = vsyncadd [#allocation3], 4294967040 }
  0x1c   :  { %263 = dma.done.wait [#allocation6], 256  }
  0x1d   :  { %264 = vsyncadd [#allocation6], 4294967040  ;;  %v102_v0 = vld [vmem:[#allocation2] sm:$0xff]  ;;  %v103_v1 = vld [vmem:[#allocation2 + $0x8] sm:$0xff]  ;;  %v273_v9 = vmov 0.0   ;;  %s274_s0 = smov [#allocation7]  }
  0x1e   :  { %v104_v2 = vld [vmem:[#allocation5] sm:$0xff]  ;;  %v105_v3 = vld [vmem:[#allocation5 + $0x8] sm:$0xff]  ;;  %s142_s1 = sshll.u32 %s274_s0, 4  ;;  %s275_s24 = smov [#allocation8]   ;;  %s143_s1 = int_to_ptr.vmem [resolvable:$true] %s142_s1 }
  0x1f   :  { %v106_v4 = vsub.f32 %v102_v0, %v104_v2  ;;  %v107_v5 = vsub.f32 %v103_v1, %v105_v3  ;;  %s152_s25 = sshll.u32 %s275_s24, 4  ;;  %s221_s26 = scalar_lea.vmem %s143_s1, 128  ;;  %s153_s25 = int_to_ptr.vmem [resolvable:$true] %s152_s25 }
  0x20   :  { %p222_p10 = scmp.ne.s32.totalorder %s143_s1, %s221_s26  ;;  %p226_p11 = scmp.lt.s32.totalorder %s143_s1, %s143_s1 }
  0x21   :  { %v108_v6 = vand.u32 2147483647, %v106_v4  ;;  %v109_v7 = vand.u32 2147483647, %v107_v5  ;;  %p227_p12 = scmp.lt.s32.totalorder %s221_s26, %s221_s26 }
  0x23   :  { %vm110_vm0 = vcmp.eq.f32.partialorder %v108_v6, %v108_v6  ;;  %vm111_vm1 = vcmp.eq.f32.partialorder %v109_v7, %v109_v7  ;;  %p228_p13 = por %p227_p12, %p226_p11 }
  0x24   :  { %v122_v8 = vsel %vm110_vm0, %v108_v6, 0.0  ;;  %v172_v10 = vsel %vm110_vm0, 1.0, %v273_v9  ;;  %v123_v11 = vsel %vm111_vm1, %v109_v7, 0.0  ;;  %v173_v12 = vsel %vm111_vm1, 1.0, %v273_v9 }
  0x25   :  { %v129_v13 = vadd.f32 %v123_v11, %v122_v8  ;;  %v133_v14 = vadd.f32 %v173_v12, %v172_v10  ;;  %p229_p0 = pnand %p228_p13, %p222_p10 }
  0x27   :  { %131 = vst [vmem:[#allocation7] sm:$0xff] %v129_v13  ;;  %135 = vst [vmem:[#allocation8] sm:$0xff] %v133_v14 }
  0x28   :  { %232 = shalt.err (!%p229_p0)
}
  0x29   :  { %145 = dma.vmem_to_hbm [thread:$0]  %s143_s1, 128, %s310_s2, [#allocation4]  }
  0x2a   :  { %s241_s29 = scalar_lea.vmem %s153_s25, 128  ;;  %p246_p2 = scmp.lt.s32.totalorder %s153_s25, %s153_s25 }
  0x2b   :  { %p242_p1 = scmp.ne.s32.totalorder %s153_s25, %s241_s29  ;;  %p247_p3 = scmp.lt.s32.totalorder %s241_s29, %s241_s29 }
  0x2d   :  { %p248_p4 = por %p247_p3, %p246_p2 }
  0x2f   :  { %p249_p5 = pnand %p248_p4, %p242_p1 }
  0x31   :  { %252 = shalt.err (!%p249_p5)
}
  0x32   :  { %155 = dma.vmem_to_hbm [thread:$0]  %s153_s25, 128, %s311_s3, [#allocation9]  }
  0x33   :  { %265 = dma.done.wait [#allocation4], 128  }
  0x34   :  { %266 = vsyncadd [#allocation4], 4294967168 }
  0x35   :  { %267 = dma.done.wait [#allocation9], 128  }
  0x36   :  { %268 = vsyncadd [#allocation9], 4294967168 }
  0x37   :  { %162 = vsyncpa [#allocation3], 1 }
  0x38   :  { %163 = vsyncpa [#allocation6], 1 }
  0x39   :  { %164 = vsyncpa [#allocation4], 1 }
  0x3a   :  { %165 = vsyncpa [#allocation9], 1 }

</bundles_post_ra>
